<compile_context>
chip_gen: v7x
topology: tpu7x:2x2x1
jax: 0.10.0
libtpu: 0.0.40
codegen_flags: <defaults>
</compile_context>

<pallas_src>
import functools

import jax
import jax.numpy as jnp
import numpy as np
from jax.experimental import pallas as pl
from jax.experimental.pallas import tpu as pltpu


# ------------------------------ Fused CNN-LSTM kernel ------------------------------

def _cnn_lstm_kernel(xp_ref, wc_ref, bc_ref, wih_ref, b_ref, whh_ref,
                     wfc_ref, bfc_ref, out_ref, xg_ref, *, hid, kernel, unroll):
    # xp_ref:  (Tp, B_blk, Cin)   time-major padded input block (f32 or bf16)
    # wc_ref:  (K, Cin, Cc)       conv weight (f32 or bf16)
    # bc_ref:  (1, Cc)            conv bias (f32)
    # wih_ref: (Cc, 4H)           W_ih^T (f32 or bf16)
    # b_ref:   (1, 4H)            b_ih + b_hh (f32)
    # whh_ref: (H, 4H)            W_hh^T (f32 or bf16)
    # wfc_ref: (1, H)             fc weight row (f32 or bf16)
    # bfc_ref: (1, 1)             fc bias (f32)
    # out_ref: (B_blk, 1)
    # xg_ref:  (T, B_blk, 4H)     VMEM scratch (f32): input-side gate pre-activations
    K = kernel
    H = hid
    Tp, Bblk, _ = xp_ref.shape
    T = Tp - (K - 1)

    x_all = xp_ref[...]                                   # (Tp, B, Cin)

    # Conv1d via K shifted contractions on the un-duplicated input (no im2col),
    # f32 accumulate, then bias + ReLU.
    acc = None
    for k in range(K):
        part = jax.lax.dot_general(
            x_all[k:k + T], wc_ref[k],
            dimension_numbers=(((2,), (0,)), ((), ())),
            preferred_element_type=jnp.float32)           # (T, B, Cc)
        acc = part if acc is None else acc + part
    y = jnp.maximum(acc + bc_ref[...][None], 0.0)         # (T, B, Cc) f32

    # LSTM input-side projection for all timesteps (one batched MXU pass).
    xg_ref[...] = jax.lax.dot_general(
        y.astype(wih_ref.dtype), wih_ref[...],
        dimension_numbers=(((2,), (0,)), ((), ())),
        preferred_element_type=jnp.float32) + b_ref[...][None]   # (T, B, 4H) f32

    # LSTM recurrence (PyTorch gate order i, f, g, o); h/c state stays f32.
    def step(t, carry):
        h, c = carry
        gates = xg_ref[t] + jax.lax.dot_general(
            h.astype(whh_ref.dtype), whh_ref[...],
            dimension_numbers=(((1,), (0,)), ((), ())),
            preferred_element_type=jnp.float32)           # (B, 4H) f32
        # sigmoid via tanh: one EUP push per gates vreg (exp+recip would be two).
        sig = 0.5 * jnp.tanh(0.5 * gates) + 0.5
        i = sig[:, 0 * H:1 * H]
        f = sig[:, 1 * H:2 * H]
        o = sig[:, 3 * H:4 * H]
        g = jnp.tanh(gates[:, 2 * H:3 * H])
        c_new = f * c + i * g
        h_new = o * jnp.tanh(c_new)
        return (h_new, c_new)

    h0 = jnp.zeros((Bblk, H), jnp.float32)
    c0 = jnp.zeros((Bblk, H), jnp.float32)
    h_last, _ = jax.lax.fori_loop(0, T, step, (h0, c0), unroll=unroll)

    # Dropout is identity in eval mode; Linear(H -> 1) on the VPU/XLU
    # (multiply + lane reduce) instead of an N=1 MXU matmul.
    w_row = wfc_ref[...].astype(jnp.float32)              # (1, H)
    out_ref[...] = jnp.sum(h_last * w_row, axis=-1, keepdims=True) + bfc_ref[...]


# --------------------------------- Tiling helpers -----------------------------------

def _pick_b_blk(B, Tp, T, cin, cc, hid, in_itemsize):
    """Largest batch block (mult. of 8, <=128) fitting a conservative VMEM budget."""
    b_pad8 = max(8, ((B + 7) // 8) * 8)
    per_row = (2 * Tp * cin * in_itemsize     # pipelined (double-buffered) input block
               + T * 4 * hid * 4              # xg scratch (f32)
               + T * cc * 4                   # conv/ReLU intermediate (f32)
               + T * 4 * hid * 4)             # gate-projection intermediate (f32)
    budget = 12 << 20                         # fits every generation's default scoped VMEM
    cap = max(8, min(128, ((budget // per_row) // 8) * 8))
    b_blk = min(cap, b_pad8)
    if b_pad8 >= 16:                          # v7x: expose >=2 grid steps for the 2 TCs
        b_blk = min(b_blk, max(8, ((b_pad8 // 2) // 8) * 8))
    return b_blk, per_row


# ------------------------------------ Wrapper ---------------------------------------

def cnn_lstm_forward(x, params, *, use_bf16=False, b_blk=None):
    """x: (B, T, Cin) channels-last (the tensor the PyTorch forward receives)."""
    conv_w, conv_b = params["conv_w"], params["conv_b"]
    K, Cin, Cc = conv_w.shape
    H = params["hid"]
    B, T, _ = x.shape
    assert K % 2 == 1, "even K changes PyTorch Conv1d(padding=K//2) output length"

    op_dtype = jnp.bfloat16 if use_bf16 else jnp.float32
    itemsize = jnp.dtype(op_dtype).itemsize
    pad_t = K // 2
    Tp = T + 2 * pad_t

    picked_b_blk, per_row = _pick_b_blk(B, Tp, T, Cin, Cc, H, itemsize)
    if b_blk is None:
        b_blk = picked_b_blk
    B_pad = ((B + b_blk - 1) // b_blk) * b_blk
    nb = B_pad // b_blk

    # Host-side layout prep (cheap one-time XLA ops): pad batch + time, go
    # time-major, cast MXU operands. Biases / state stay f32.
    xp = jnp.pad(x, ((0, B_pad - B), (pad_t, pad_t), (0, 0)))
    xp_tm = jnp.transpose(xp, (1, 0, 2)).astype(op_dtype)        # (Tp, B_pad, Cin)

    wc = conv_w.astype(op_dtype)                                 # (K, Cin, Cc)
    bc = conv_b.reshape(1, Cc).astype(jnp.float32)
    wih = params["w_ih"].T.astype(op_dtype)                      # (Cc, 4H)
    whh = params["w_hh"].T.astype(op_dtype)                      # (H, 4H)
    bg = params["b"].reshape(1, 4 * H).astype(jnp.float32)
    wfc = params["fc_w"].reshape(1, H).astype(op_dtype)          # (1, H) row
    bfc = params["fc_b"].reshape(1, 1).astype(jnp.float32)

    # Advisory cost + VMEM limit (with headroom, valid on v7x's 64 MiB VMEM).
    flops = (2 * B_pad * T * K * Cin * Cc + 2 * B_pad * T * Cc * 4 * H
             + 2 * T * B_pad * H * 4 * H + 2 * B_pad * H)
    transcendentals = T * B_pad * 6 * H
    bytes_accessed = (xp_tm.size + wc.size + wih.size + whh.size + wfc.size) * itemsize \
        + 4 * (bc.size + bg.size + bfc.size + B_pad)
    weight_bytes = (wc.size + wih.size + whh.size + wfc.size) * itemsize \
        + 4 * (bc.size + bg.size + bfc.size)
    est_vmem = b_blk * per_row + 2 * weight_bytes
    vmem_limit = int(min(64 << 20, max(32 << 20, 2 * est_vmem)))

    out = pl.pallas_call(
        functools.partial(_cnn_lstm_kernel, hid=H, kernel=K,
                          unroll=(True if T <= 16 else 8)),
        out_shape=jax.ShapeDtypeStruct((B_pad, 1), jnp.float32),
        grid=(nb,),
        in_specs=[
            pl.BlockSpec((Tp, b_blk, Cin), lambda i: (0, i, 0)),
            pl.BlockSpec((K, Cin, Cc), lambda i: (0, 0, 0)),
            pl.BlockSpec((1, Cc), lambda i: (0, 0)),
            pl.BlockSpec((Cc, 4 * H), lambda i: (0, 0)),
            pl.BlockSpec((1, 4 * H), lambda i: (0, 0)),
            pl.BlockSpec((H, 4 * H), lambda i: (0, 0)),
            pl.BlockSpec((1, H), lambda i: (0, 0)),
            pl.BlockSpec((1, 1), lambda i: (0, 0)),
        ],
        out_specs=pl.BlockSpec((b_blk, 1), lambda i: (i, 0)),
        scratch_shapes=[pltpu.VMEM((T, b_blk, 4 * H), jnp.float32)],
        compiler_params=pltpu.CompilerParams(
            dimension_semantics=("parallel",),
            vmem_limit_bytes=vmem_limit),
        cost_estimate=pl.CostEstimate(
            flops=int(flops), transcendentals=int(transcendentals),
            bytes_accessed=int(bytes_accessed)),
    )(xp_tm, wc, bc, wih, bg, whh, wfc, bfc)
    return out[:B]


# --------------------------------- Params / reference -------------------------------

def init_params(key, inp_dim, conv_ch, kernel, lstm_hid):
    ks = jax.random.split(key, 8)
    s = 0.1
    # Conv1d weight stored as (K, Cin, Cout)  (PyTorch layout is (Cout, Cin, K)).
    conv_w = s * jax.random.normal(ks[0], (kernel, inp_dim, conv_ch), jnp.float32)
    conv_b = s * jax.random.normal(ks[1], (conv_ch,), jnp.float32)
    w_ih = s * jax.random.normal(ks[2], (4 * lstm_hid, conv_ch), jnp.float32)
    w_hh = s * jax.random.normal(ks[3], (4 * lstm_hid, lstm_hid), jnp.float32)
    b_ih = s * jax.random.normal(ks[4], (4 * lstm_hid,), jnp.float32)
    b_hh = s * jax.random.normal(ks[5], (4 * lstm_hid,), jnp.float32)
    fc_w = s * jax.random.normal(ks[6], (1, lstm_hid), jnp.float32)
    fc_b = s * jax.random.normal(ks[7], (1,), jnp.float32)
    return dict(conv_w=conv_w, conv_b=conv_b, w_ih=w_ih, w_hh=w_hh,
                b=b_ih + b_hh, fc_w=fc_w, fc_b=fc_b,
                kernel=kernel, hid=lstm_hid)


def reference_forward(x, params):
    K, hid = params["kernel"], params["hid"]
    pad = K // 2
    B, T, _ = x.shape
    xp = jnp.pad(x, ((0, 0), (pad, pad), (0, 0)))
    y = sum(jnp.einsum("btc,co->bto", xp[:, k:k + T, :], params["conv_w"][k])
            for k in range(K)) + params["conv_b"]
    y = jnp.maximum(y, 0.0)

    def step(carry, y_t):
        h, c = carry
        gates = y_t @ params["w_ih"].T + h @ params["w_hh"].T + params["b"]
        i = jax.nn.sigmoid(gates[:, 0 * hid:1 * hid])
        f = jax.nn.sigmoid(gates[:, 1 * hid:2 * hid])
        g = jnp.tanh(gates[:, 2 * hid:3 * hid])
        o = jax.nn.sigmoid(gates[:, 3 * hid:4 * hid])
        c = f * c + i * g
        h = o * jnp.tanh(c)
        return (h, c), None

    h0 = jnp.zeros((B, hid), jnp.float32)
    (h_last, _), _ = jax.lax.scan(step, (h0, h0), jnp.swapaxes(y, 0, 1))
    return h_last @ params["fc_w"].T + params["fc_b"]


# ------------------------------------- Main ------------------------------------------

if __name__ == "__main__":
    B, T, INP_DIM = 2, 8, 4
    CONV_CH, KERNEL, LSTM_HID = 16, 3, 32

    key = jax.random.PRNGKey(0)
    k_x, k_p = jax.random.split(key)
    x = jax.random.normal(k_x, (B, T, INP_DIM), jnp.float32)
    params = init_params(k_p, INP_DIM, CONV_CH, KERNEL, LSTM_HID)

    ref = jax.block_until_ready(reference_forward(x, params))

    # f32 operands: must match the f32 reference tightly.
    out = jax.block_until_ready(cnn_lstm_forward(x, params))
    assert out.shape == (B, 1), out.shape
    np.testing.assert_allclose(np.asarray(out), np.asarray(ref), atol=1e-5, rtol=1e-5)

    # bf16 MXU operands (f32 accumulate / f32 state): looser tolerance.
    out_bf16 = jax.block_until_ready(cnn_lstm_forward(x, params, use_bf16=True))
    assert out_bf16.shape == (B, 1), out_bf16.shape
    np.testing.assert_allclose(np.asarray(out_bf16), np.asarray(ref),
                               atol=3e-2, rtol=3e-2)

    print("KERNEL_OK")
</pallas_src>

<mosaic_0001>
module attributes {stable_mosaic.version = 11 : i64} {
  func.func @_cnn_lstm_kernel(%arg0: i32, %arg1: memref<10x8x4xf32, #tpu.memory_space<vmem>>, %arg2: memref<3x4x16xf32, #tpu.memory_space<vmem>>, %arg3: memref<1x16xf32, #tpu.memory_space<vmem>>, %arg4: memref<16x128xf32, #tpu.memory_space<vmem>>, %arg5: memref<1x128xf32, #tpu.memory_space<vmem>>, %arg6: memref<32x128xf32, #tpu.memory_space<vmem>>, %arg7: memref<1x32xf32, #tpu.memory_space<vmem>>, %arg8: memref<1x1xf32, #tpu.memory_space<vmem>>, %arg9: memref<8x1xf32, #tpu.memory_space<vmem>>, %arg10: memref<8x8x128xf32, #tpu.memory_space<vmem>>) attributes {dimension_semantics = [#tpu.dimension_semantics<parallel>], iteration_bounds = array<i64: 1>, scalar_prefetch = 0 : i64, scratch_operands = 1 : i64, tpu.core_type = #tpu.core_type<tc>, window_params = [{transform_indices = @transform_0, window_bounds = array<i64: 10, 8, 4>}, {pipeline_mode = #tpu.pipeline_mode<synchronous>, transform_indices = @transform_1, window_bounds = array<i64: 3, 4, 16>}, {pipeline_mode = #tpu.pipeline_mode<synchronous>, transform_indices = @transform_2, window_bounds = array<i64: 1, 16>}, {pipeline_mode = #tpu.pipeline_mode<synchronous>, transform_indices = @transform_3, window_bounds = array<i64: 16, 128>}, {pipeline_mode = #tpu.pipeline_mode<synchronous>, transform_indices = @transform_4, window_bounds = array<i64: 1, 128>}, {pipeline_mode = #tpu.pipeline_mode<synchronous>, transform_indices = @transform_5, window_bounds = array<i64: 32, 128>}, {pipeline_mode = #tpu.pipeline_mode<synchronous>, transform_indices = @transform_6, window_bounds = array<i64: 1, 32>}, {pipeline_mode = #tpu.pipeline_mode<synchronous>, transform_indices = @transform_7, window_bounds = array<i64: 1, 1>}, {transform_indices = @transform_8, window_bounds = array<i64: 8, 1>}]} {
    %c0 = arith.constant 0 : index
    %c0_0 = arith.constant 0 : index
    %c0_1 = arith.constant 0 : index
    %0 = vector.load %arg1[%c0, %c0_0, %c0_1] : memref<10x8x4xf32, #tpu.memory_space<vmem>>, vector<10x8x4xf32>
    %1 = vector.extract_strided_slice %0 {offsets = [0, 0, 0], sizes = [8, 8, 4], strides = [1, 1, 1]} : vector<10x8x4xf32> to vector<8x8x4xf32>
    %c0_2 = arith.constant 0 : index
    %c0_3 = arith.constant 0 : index
    %c0_4 = arith.constant 0 : index
    %2 = vector.load %arg2[%c0_2, %c0_3, %c0_4] : memref<3x4x16xf32, #tpu.memory_space<vmem>>, vector<1x4x16xf32>
    %3 = vector.shape_cast %2 : vector<1x4x16xf32> to vector<4x16xf32>
    %cst = arith.constant dense<0.000000e+00> : vector<8x8x16xf32>
    %4 = tpu.matmul %1, %3, %cst {dimension_numbers = #tpu.dot_dimension_numbers<[2], [0], [0, 1], [1], [0, 0, 0, 1, 1, 1], [], []>} : vector<8x8x4xf32>, vector<4x16xf32>, vector<8x8x16xf32> -> vector<8x8x16xf32>
    %5 = vector.extract_strided_slice %0 {offsets = [1, 0, 0], sizes = [8, 8, 4], strides = [1, 1, 1]} : vector<10x8x4xf32> to vector<8x8x4xf32>
    %c1 = arith.constant 1 : index
    %c0_5 = arith.constant 0 : index
    %c0_6 = arith.constant 0 : index
    %6 = vector.load %arg2[%c1, %c0_5, %c0_6] : memref<3x4x16xf32, #tpu.memory_space<vmem>>, vector<1x4x16xf32>
    %7 = vector.shape_cast %6 : vector<1x4x16xf32> to vector<4x16xf32>
    %cst_7 = arith.constant dense<0.000000e+00> : vector<8x8x16xf32>
    %8 = tpu.matmul %5, %7, %cst_7 {dimension_numbers = #tpu.dot_dimension_numbers<[2], [0], [0, 1], [1], [0, 0, 0, 1, 1, 1], [], []>} : vector<8x8x4xf32>, vector<4x16xf32>, vector<8x8x16xf32> -> vector<8x8x16xf32>
    %9 = arith.addf %4, %8 : vector<8x8x16xf32>
    %10 = vector.extract_strided_slice %0 {offsets = [2, 0, 0], sizes = [8, 8, 4], strides = [1, 1, 1]} : vector<10x8x4xf32> to vector<8x8x4xf32>
    %c2 = arith.constant 2 : index
    %c0_8 = arith.constant 0 : index
    %c0_9 = arith.constant 0 : index
    %11 = vector.load %arg2[%c2, %c0_8, %c0_9] : memref<3x4x16xf32, #tpu.memory_space<vmem>>, vector<1x4x16xf32>
    %12 = vector.shape_cast %11 : vector<1x4x16xf32> to vector<4x16xf32>
    %cst_10 = arith.constant dense<0.000000e+00> : vector<8x8x16xf32>
    %13 = tpu.matmul %10, %12, %cst_10 {dimension_numbers = #tpu.dot_dimension_numbers<[2], [0], [0, 1], [1], [0, 0, 0, 1, 1, 1], [], []>} : vector<8x8x4xf32>, vector<4x16xf32>, vector<8x8x16xf32> -> vector<8x8x16xf32>
    %14 = arith.addf %9, %13 : vector<8x8x16xf32>
    %c0_11 = arith.constant 0 : index
    %c0_12 = arith.constant 0 : index
    %15 = vector.load %arg3[%c0_11, %c0_12] : memref<1x16xf32, #tpu.memory_space<vmem>>, vector<1x16xf32>
    %16 = vector.shape_cast %15 : vector<1x16xf32> to vector<1x1x16xf32>
    %17 = vector.broadcast %16 : vector<1x1x16xf32> to vector<8x8x16xf32>
    %18 = arith.addf %14, %17 : vector<8x8x16xf32>
    %cst_13 = arith.constant 0.000000e+00 : f32
    %19 = vector.broadcast %cst_13 : f32 to vector<8x8x16xf32>
    %20 = arith.maximumf %18, %19 : vector<8x8x16xf32>
    %c0_14 = arith.constant 0 : index
    %c0_15 = arith.constant 0 : index
    %21 = vector.load %arg4[%c0_14, %c0_15] : memref<16x128xf32, #tpu.memory_space<vmem>>, vector<16x128xf32>
    %cst_16 = arith.constant dense<0.000000e+00> : vector<8x8x128xf32>
    %22 = tpu.matmul %20, %21, %cst_16 {dimension_numbers = #tpu.dot_dimension_numbers<[2], [0], [0, 1], [1], [0, 0, 0, 1, 1, 1], [], []>} : vector<8x8x16xf32>, vector<16x128xf32>, vector<8x8x128xf32> -> vector<8x8x128xf32>
    %c0_17 = arith.constant 0 : index
    %c0_18 = arith.constant 0 : index
    %23 = vector.load %arg5[%c0_17, %c0_18] : memref<1x128xf32, #tpu.memory_space<vmem>>, vector<1x128xf32>
    %24 = vector.shape_cast %23 : vector<1x128xf32> to vector<1x1x128xf32>
    %25 = vector.broadcast %24 : vector<1x1x128xf32> to vector<8x8x128xf32>
    %26 = arith.addf %22, %25 : vector<8x8x128xf32>
    %c0_19 = arith.constant 0 : index
    %c0_20 = arith.constant 0 : index
    %c0_21 = arith.constant 0 : index
    %27 = vector.load %arg10[%c0_19, %c0_20, %c0_21] : memref<8x8x128xf32, #tpu.memory_space<vmem>>, vector<8x8x128xf32>
    tpu.vector_store %arg10[%c0_19, %c0_20, %c0_21], %26 {strides = array<i32>} : memref<8x8x128xf32, #tpu.memory_space<vmem>>, vector<8x8x128xf32>,
    %cst_22 = arith.constant 0.000000e+00 : f32
    %28 = vector.broadcast %cst_22 : f32 to vector<8x32xf32>
    %cst_23 = arith.constant 0.000000e+00 : f32
    %29 = vector.broadcast %cst_23 : f32 to vector<8x32xf32>
    %c0_i32 = arith.constant 0 : i32
    %30 = arith.index_cast %c0_i32 : i32 to index
    %c0_24 = arith.constant 0 : index
    %c0_25 = arith.constant 0 : index
    %31 = vector.load %arg10[%30, %c0_24, %c0_25] : memref<8x8x128xf32, #tpu.memory_space<vmem>>, vector<1x8x128xf32>
    %32 = vector.shape_cast %31 : vector<1x8x128xf32> to vector<8x128xf32>
    %c0_26 = arith.constant 0 : index
    %c0_27 = arith.constant 0 : index
    %33 = vector.load %arg6[%c0_26, %c0_27] : memref<32x128xf32, #tpu.memory_space<vmem>>, vector<32x128xf32>
    %cst_28 = arith.constant dense<0.000000e+00> : vector<8x128xf32>
    %34 = tpu.matmul %28, %33, %cst_28 {dimension_numbers = #tpu.dot_dimension_numbers<[1], [0], [0], [1], [0, 0, 1, 1], [], []>} : vector<8x32xf32>, vector<32x128xf32>, vector<8x128xf32> -> vector<8x128xf32>
    %35 = arith.addf %32, %34 : vector<8x128xf32>
    %cst_29 = arith.constant 5.000000e-01 : f32
    %36 = vector.broadcast %cst_29 : f32 to vector<8x128xf32>
    %37 = arith.mulf %36, %35 : vector<8x128xf32>
    %38 = math.tanh %37 : vector<8x128xf32>
    %cst_30 = arith.constant 5.000000e-01 : f32
    %39 = vector.broadcast %cst_30 : f32 to vector<8x128xf32>
    %40 = arith.mulf %39, %38 : vector<8x128xf32>
    %cst_31 = arith.constant 5.000000e-01 : f32
    %41 = vector.broadcast %cst_31 : f32 to vector<8x128xf32>
    %42 = arith.addf %40, %41 : vector<8x128xf32>
    %43 = vector.extract_strided_slice %42 {offsets = [0, 0], sizes = [8, 32], strides = [1, 1]} : vector<8x128xf32> to vector<8x32xf32>
    %44 = vector.extract_strided_slice %42 {offsets = [0, 32], sizes = [8, 32], strides = [1, 1]} : vector<8x128xf32> to vector<8x32xf32>
    %45 = vector.extract_strided_slice %42 {offsets = [0, 96], sizes = [8, 32], strides = [1, 1]} : vector<8x128xf32> to vector<8x32xf32>
    %46 = vector.extract_strided_slice %35 {offsets = [0, 64], sizes = [8, 32], strides = [1, 1]} : vector<8x128xf32> to vector<8x32xf32>
    %47 = math.tanh %46 : vector<8x32xf32>
    %48 = arith.mulf %44, %29 : vector<8x32xf32>
    %49 = arith.mulf %43, %47 : vector<8x32xf32>
    %50 = arith.addf %48, %49 : vector<8x32xf32>
    %51 = math.tanh %50 : vector<8x32xf32>
    %52 = arith.mulf %45, %51 : vector<8x32xf32>
    %c1_i32 = arith.constant 1 : i32
    %53 = arith.index_cast %c1_i32 : i32 to index
    %c0_32 = arith.constant 0 : index
    %c0_33 = arith.constant 0 : index
    %54 = vector.load %arg10[%53, %c0_32, %c0_33] : memref<8x8x128xf32, #tpu.memory_space<vmem>>, vector<1x8x128xf32>
    %55 = vector.shape_cast %54 : vector<1x8x128xf32> to vector<8x128xf32>
    %c0_34 = arith.constant 0 : index
    %c0_35 = arith.constant 0 : index
    %56 = vector.load %arg6[%c0_34, %c0_35] : memref<32x128xf32, #tpu.memory_space<vmem>>, vector<32x128xf32>
    %cst_36 = arith.constant dense<0.000000e+00> : vector<8x128xf32>
    %57 = tpu.matmul %52, %56, %cst_36 {dimension_numbers = #tpu.dot_dimension_numbers<[1], [0], [0], [1], [0, 0, 1, 1], [], []>} : vector<8x32xf32>, vector<32x128xf32>, vector<8x128xf32> -> vector<8x128xf32>
    %58 = arith.addf %55, %57 : vector<8x128xf32>
    %cst_37 = arith.constant 5.000000e-01 : f32
    %59 = vector.broadcast %cst_37 : f32 to vector<8x128xf32>
    %60 = arith.mulf %59, %58 : vector<8x128xf32>
    %61 = math.tanh %60 : vector<8x128xf32>
    %cst_38 = arith.constant 5.000000e-01 : f32
    %62 = vector.broadcast %cst_38 : f32 to vector<8x128xf32>
    %63 = arith.mulf %62, %61 : vector<8x128xf32>
    %cst_39 = arith.constant 5.000000e-01 : f32
    %64 = vector.broadcast %cst_39 : f32 to vector<8x128xf32>
    %65 = arith.addf %63, %64 : vector<8x128xf32>
    %66 = vector.extract_strided_slice %65 {offsets = [0, 0], sizes = [8, 32], strides = [1, 1]} : vector<8x128xf32> to vector<8x32xf32>
    %67 = vector.extract_strided_slice %65 {offsets = [0, 32], sizes = [8, 32], strides = [1, 1]} : vector<8x128xf32> to vector<8x32xf32>
    %68 = vector.extract_strided_slice %65 {offsets = [0, 96], sizes = [8, 32], strides = [1, 1]} : vector<8x128xf32> to vector<8x32xf32>
    %69 = vector.extract_strided_slice %58 {offsets = [0, 64], sizes = [8, 32], strides = [1, 1]} : vector<8x128xf32> to vector<8x32xf32>
    %70 = math.tanh %69 : vector<8x32xf32>
    %71 = arith.mulf %67, %50 : vector<8x32xf32>
    %72 = arith.mulf %66, %70 : vector<8x32xf32>
    %73 = arith.addf %71, %72 : vector<8x32xf32>
    %74 = math.tanh %73 : vector<8x32xf32>
    %75 = arith.mulf %68, %74 : vector<8x32xf32>
    %c2_i32 = arith.constant 2 : i32
    %76 = arith.index_cast %c2_i32 : i32 to index
    %c0_40 = arith.constant 0 : index
    %c0_41 = arith.constant 0 : index
    %77 = vector.load %arg10[%76, %c0_40, %c0_41] : memref<8x8x128xf32, #tpu.memory_space<vmem>>, vector<1x8x128xf32>
    %78 = vector.shape_cast %77 : vector<1x8x128xf32> to vector<8x128xf32>
    %c0_42 = arith.constant 0 : index
    %c0_43 = arith.constant 0 : index
    %79 = vector.load %arg6[%c0_42, %c0_43] : memref<32x128xf32, #tpu.memory_space<vmem>>, vector<32x128xf32>
    %cst_44 = arith.constant dense<0.000000e+00> : vector<8x128xf32>
    %80 = tpu.matmul %75, %79, %cst_44 {dimension_numbers = #tpu.dot_dimension_numbers<[1], [0], [0], [1], [0, 0, 1, 1], [], []>} : vector<8x32xf32>, vector<32x128xf32>, vector<8x128xf32> -> vector<8x128xf32>
    %81 = arith.addf %78, %80 : vector<8x128xf32>
    %cst_45 = arith.constant 5.000000e-01 : f32
    %82 = vector.broadcast %cst_45 : f32 to vector<8x128xf32>
    %83 = arith.mulf %82, %81 : vector<8x128xf32>
    %84 = math.tanh %83 : vector<8x128xf32>
    %cst_46 = arith.constant 5.000000e-01 : f32
    %85 = vector.broadcast %cst_46 : f32 to vector<8x128xf32>
    %86 = arith.mulf %85, %84 : vector<8x128xf32>
    %cst_47 = arith.constant 5.000000e-01 : f32
    %87 = vector.broadcast %cst_47 : f32 to vector<8x128xf32>
    %88 = arith.addf %86, %87 : vector<8x128xf32>
    %89 = vector.extract_strided_slice %88 {offsets = [0, 0], sizes = [8, 32], strides = [1, 1]} : vector<8x128xf32> to vector<8x32xf32>
    %90 = vector.extract_strided_slice %88 {offsets = [0, 32], sizes = [8, 32], strides = [1, 1]} : vector<8x128xf32> to vector<8x32xf32>
    %91 = vector.extract_strided_slice %88 {offsets = [0, 96], sizes = [8, 32], strides = [1, 1]} : vector<8x128xf32> to vector<8x32xf32>
    %92 = vector.extract_strided_slice %81 {offsets = [0, 64], sizes = [8, 32], strides = [1, 1]} : vector<8x128xf32> to vector<8x32xf32>
    %93 = math.tanh %92 : vector<8x32xf32>
    %94 = arith.mulf %90, %73 : vector<8x32xf32>
    %95 = arith.mulf %89, %93 : vector<8x32xf32>
    %96 = arith.addf %94, %95 : vector<8x32xf32>
    %97 = math.tanh %96 : vector<8x32xf32>
    %98 = arith.mulf %91, %97 : vector<8x32xf32>
    %c3_i32 = arith.constant 3 : i32
    %99 = arith.index_cast %c3_i32 : i32 to index
    %c0_48 = arith.constant 0 : index
    %c0_49 = arith.constant 0 : index
    %100 = vector.load %arg10[%99, %c0_48, %c0_49] : memref<8x8x128xf32, #tpu.memory_space<vmem>>, vector<1x8x128xf32>
    %101 = vector.shape_cast %100 : vector<1x8x128xf32> to vector<8x128xf32>
    %c0_50 = arith.constant 0 : index
    %c0_51 = arith.constant 0 : index
    %102 = vector.load %arg6[%c0_50, %c0_51] : memref<32x128xf32, #tpu.memory_space<vmem>>, vector<32x128xf32>
    %cst_52 = arith.constant dense<0.000000e+00> : vector<8x128xf32>
    %103 = tpu.matmul %98, %102, %cst_52 {dimension_numbers = #tpu.dot_dimension_numbers<[1], [0], [0], [1], [0, 0, 1, 1], [], []>} : vector<8x32xf32>, vector<32x128xf32>, vector<8x128xf32> -> vector<8x128xf32>
    %104 = arith.addf %101, %103 : vector<8x128xf32>
    %cst_53 = arith.constant 5.000000e-01 : f32
    %105 = vector.broadcast %cst_53 : f32 to vector<8x128xf32>
    %106 = arith.mulf %105, %104 : vector<8x128xf32>
    %107 = math.tanh %106 : vector<8x128xf32>
    %cst_54 = arith.constant 5.000000e-01 : f32
    %108 = vector.broadcast %cst_54 : f32 to vector<8x128xf32>
    %109 = arith.mulf %108, %107 : vector<8x128xf32>
    %cst_55 = arith.constant 5.000000e-01 : f32
    %110 = vector.broadcast %cst_55 : f32 to vector<8x128xf32>
    %111 = arith.addf %109, %110 : vector<8x128xf32>
    %112 = vector.extract_strided_slice %111 {offsets = [0, 0], sizes = [8, 32], strides = [1, 1]} : vector<8x128xf32> to vector<8x32xf32>
    %113 = vector.extract_strided_slice %111 {offsets = [0, 32], sizes = [8, 32], strides = [1, 1]} : vector<8x128xf32> to vector<8x32xf32>
    %114 = vector.extract_strided_slice %111 {offsets = [0, 96], sizes = [8, 32], strides = [1, 1]} : vector<8x128xf32> to vector<8x32xf32>
    %115 = vector.extract_strided_slice %104 {offsets = [0, 64], sizes = [8, 32], strides = [1, 1]} : vector<8x128xf32> to vector<8x32xf32>
    %116 = math.tanh %115 : vector<8x32xf32>
    %117 = arith.mulf %113, %96 : vector<8x32xf32>
    %118 = arith.mulf %112, %116 : vector<8x32xf32>
    %119 = arith.addf %117, %118 : vector<8x32xf32>
    %120 = math.tanh %119 : vector<8x32xf32>
    %121 = arith.mulf %114, %120 : vector<8x32xf32>
    %c4_i32 = arith.constant 4 : i32
    %122 = arith.index_cast %c4_i32 : i32 to index
    %c0_56 = arith.constant 0 : index
    %c0_57 = arith.constant 0 : index
    %123 = vector.load %arg10[%122, %c0_56, %c0_57] : memref<8x8x128xf32, #tpu.memory_space<vmem>>, vector<1x8x128xf32>
    %124 = vector.shape_cast %123 : vector<1x8x128xf32> to vector<8x128xf32>
    %c0_58 = arith.constant 0 : index
    %c0_59 = arith.constant 0 : index
    %125 = vector.load %arg6[%c0_58, %c0_59] : memref<32x128xf32, #tpu.memory_space<vmem>>, vector<32x128xf32>
    %cst_60 = arith.constant dense<0.000000e+00> : vector<8x128xf32>
    %126 = tpu.matmul %121, %125, %cst_60 {dimension_numbers = #tpu.dot_dimension_numbers<[1], [0], [0], [1], [0, 0, 1, 1], [], []>} : vector<8x32xf32>, vector<32x128xf32>, vector<8x128xf32> -> vector<8x128xf32>
    %127 = arith.addf %124, %126 : vector<8x128xf32>
    %cst_61 = arith.constant 5.000000e-01 : f32
    %128 = vector.broadcast %cst_61 : f32 to vector<8x128xf32>
    %129 = arith.mulf %128, %127 : vector<8x128xf32>
    %130 = math.tanh %129 : vector<8x128xf32>
    %cst_62 = arith.constant 5.000000e-01 : f32
    %131 = vector.broadcast %cst_62 : f32 to vector<8x128xf32>
    %132 = arith.mulf %131, %130 : vector<8x128xf32>
    %cst_63 = arith.constant 5.000000e-01 : f32
    %133 = vector.broadcast %cst_63 : f32 to vector<8x128xf32>
    %134 = arith.addf %132, %133 : vector<8x128xf32>
    %135 = vector.extract_strided_slice %134 {offsets = [0, 0], sizes = [8, 32], strides = [1, 1]} : vector<8x128xf32> to vector<8x32xf32>
    %136 = vector.extract_strided_slice %134 {offsets = [0, 32], sizes = [8, 32], strides = [1, 1]} : vector<8x128xf32> to vector<8x32xf32>
    %137 = vector.extract_strided_slice %134 {offsets = [0, 96], sizes = [8, 32], strides = [1, 1]} : vector<8x128xf32> to vector<8x32xf32>
    %138 = vector.extract_strided_slice %127 {offsets = [0, 64], sizes = [8, 32], strides = [1, 1]} : vector<8x128xf32> to vector<8x32xf32>
    %139 = math.tanh %138 : vector<8x32xf32>
    %140 = arith.mulf %136, %119 : vector<8x32xf32>
    %141 = arith.mulf %135, %139 : vector<8x32xf32>
    %142 = arith.addf %140, %141 : vector<8x32xf32>
    %143 = math.tanh %142 : vector<8x32xf32>
    %144 = arith.mulf %137, %143 : vector<8x32xf32>
    %c5_i32 = arith.constant 5 : i32
    %145 = arith.index_cast %c5_i32 : i32 to index
    %c0_64 = arith.constant 0 : index
    %c0_65 = arith.constant 0 : index
    %146 = vector.load %arg10[%145, %c0_64, %c0_65] : memref<8x8x128xf32, #tpu.memory_space<vmem>>, vector<1x8x128xf32>
    %147 = vector.shape_cast %146 : vector<1x8x128xf32> to vector<8x128xf32>
    %c0_66 = arith.constant 0 : index
    %c0_67 = arith.constant 0 : index
    %148 = vector.load %arg6[%c0_66, %c0_67] : memref<32x128xf32, #tpu.memory_space<vmem>>, vector<32x128xf32>
    %cst_68 = arith.constant dense<0.000000e+00> : vector<8x128xf32>
    %149 = tpu.matmul %144, %148, %cst_68 {dimension_numbers = #tpu.dot_dimension_numbers<[1], [0], [0], [1], [0, 0, 1, 1], [], []>} : vector<8x32xf32>, vector<32x128xf32>, vector<8x128xf32> -> vector<8x128xf32>
    %150 = arith.addf %147, %149 : vector<8x128xf32>
    %cst_69 = arith.constant 5.000000e-01 : f32
    %151 = vector.broadcast %cst_69 : f32 to vector<8x128xf32>
    %152 = arith.mulf %151, %150 : vector<8x128xf32>
    %153 = math.tanh %152 : vector<8x128xf32>
    %cst_70 = arith.constant 5.000000e-01 : f32
    %154 = vector.broadcast %cst_70 : f32 to vector<8x128xf32>
    %155 = arith.mulf %154, %153 : vector<8x128xf32>
    %cst_71 = arith.constant 5.000000e-01 : f32
    %156 = vector.broadcast %cst_71 : f32 to vector<8x128xf32>
    %157 = arith.addf %155, %156 : vector<8x128xf32>
    %158 = vector.extract_strided_slice %157 {offsets = [0, 0], sizes = [8, 32], strides = [1, 1]} : vector<8x128xf32> to vector<8x32xf32>
    %159 = vector.extract_strided_slice %157 {offsets = [0, 32], sizes = [8, 32], strides = [1, 1]} : vector<8x128xf32> to vector<8x32xf32>
    %160 = vector.extract_strided_slice %157 {offsets = [0, 96], sizes = [8, 32], strides = [1, 1]} : vector<8x128xf32> to vector<8x32xf32>
    %161 = vector.extract_strided_slice %150 {offsets = [0, 64], sizes = [8, 32], strides = [1, 1]} : vector<8x128xf32> to vector<8x32xf32>
    %162 = math.tanh %161 : vector<8x32xf32>
    %163 = arith.mulf %159, %142 : vector<8x32xf32>
    %164 = arith.mulf %158, %162 : vector<8x32xf32>
    %165 = arith.addf %163, %164 : vector<8x32xf32>
    %166 = math.tanh %165 : vector<8x32xf32>
    %167 = arith.mulf %160, %166 : vector<8x32xf32>
    %c6_i32 = arith.constant 6 : i32
    %168 = arith.index_cast %c6_i32 : i32 to index
    %c0_72 = arith.constant 0 : index
    %c0_73 = arith.constant 0 : index
    %169 = vector.load %arg10[%168, %c0_72, %c0_73] : memref<8x8x128xf32, #tpu.memory_space<vmem>>, vector<1x8x128xf32>
    %170 = vector.shape_cast %169 : vector<1x8x128xf32> to vector<8x128xf32>
    %c0_74 = arith.constant 0 : index
    %c0_75 = arith.constant 0 : index
    %171 = vector.load %arg6[%c0_74, %c0_75] : memref<32x128xf32, #tpu.memory_space<vmem>>, vector<32x128xf32>
    %cst_76 = arith.constant dense<0.000000e+00> : vector<8x128xf32>
    %172 = tpu.matmul %167, %171, %cst_76 {dimension_numbers = #tpu.dot_dimension_numbers<[1], [0], [0], [1], [0, 0, 1, 1], [], []>} : vector<8x32xf32>, vector<32x128xf32>, vector<8x128xf32> -> vector<8x128xf32>
    %173 = arith.addf %170, %172 : vector<8x128xf32>
    %cst_77 = arith.constant 5.000000e-01 : f32
    %174 = vector.broadcast %cst_77 : f32 to vector<8x128xf32>
    %175 = arith.mulf %174, %173 : vector<8x128xf32>
    %176 = math.tanh %175 : vector<8x128xf32>
    %cst_78 = arith.constant 5.000000e-01 : f32
    %177 = vector.broadcast %cst_78 : f32 to vector<8x128xf32>
    %178 = arith.mulf %177, %176 : vector<8x128xf32>
    %cst_79 = arith.constant 5.000000e-01 : f32
    %179 = vector.broadcast %cst_79 : f32 to vector<8x128xf32>
    %180 = arith.addf %178, %179 : vector<8x128xf32>
    %181 = vector.extract_strided_slice %180 {offsets = [0, 0], sizes = [8, 32], strides = [1, 1]} : vector<8x128xf32> to vector<8x32xf32>
    %182 = vector.extract_strided_slice %180 {offsets = [0, 32], sizes = [8, 32], strides = [1, 1]} : vector<8x128xf32> to vector<8x32xf32>
    %183 = vector.extract_strided_slice %180 {offsets = [0, 96], sizes = [8, 32], strides = [1, 1]} : vector<8x128xf32> to vector<8x32xf32>
    %184 = vector.extract_strided_slice %173 {offsets = [0, 64], sizes = [8, 32], strides = [1, 1]} : vector<8x128xf32> to vector<8x32xf32>
    %185 = math.tanh %184 : vector<8x32xf32>
    %186 = arith.mulf %182, %165 : vector<8x32xf32>
    %187 = arith.mulf %181, %185 : vector<8x32xf32>
    %188 = arith.addf %186, %187 : vector<8x32xf32>
    %189 = math.tanh %188 : vector<8x32xf32>
    %190 = arith.mulf %183, %189 : vector<8x32xf32>
    %c7_i32 = arith.constant 7 : i32
    %191 = arith.index_cast %c7_i32 : i32 to index
    %c0_80 = arith.constant 0 : index
    %c0_81 = arith.constant 0 : index
    %192 = vector.load %arg10[%191, %c0_80, %c0_81] : memref<8x8x128xf32, #tpu.memory_space<vmem>>, vector<1x8x128xf32>
    %193 = vector.shape_cast %192 : vector<1x8x128xf32> to vector<8x128xf32>
    %c0_82 = arith.constant 0 : index
    %c0_83 = arith.constant 0 : index
    %194 = vector.load %arg6[%c0_82, %c0_83] : memref<32x128xf32, #tpu.memory_space<vmem>>, vector<32x128xf32>
    %cst_84 = arith.constant dense<0.000000e+00> : vector<8x128xf32>
    %195 = tpu.matmul %190, %194, %cst_84 {dimension_numbers = #tpu.dot_dimension_numbers<[1], [0], [0], [1], [0, 0, 1, 1], [], []>} : vector<8x32xf32>, vector<32x128xf32>, vector<8x128xf32> -> vector<8x128xf32>
    %196 = arith.addf %193, %195 : vector<8x128xf32>
    %cst_85 = arith.constant 5.000000e-01 : f32
    %197 = vector.broadcast %cst_85 : f32 to vector<8x128xf32>
    %198 = arith.mulf %197, %196 : vector<8x128xf32>
    %199 = math.tanh %198 : vector<8x128xf32>
    %cst_86 = arith.constant 5.000000e-01 : f32
    %200 = vector.broadcast %cst_86 : f32 to vector<8x128xf32>
    %201 = arith.mulf %200, %199 : vector<8x128xf32>
    %cst_87 = arith.constant 5.000000e-01 : f32
    %202 = vector.broadcast %cst_87 : f32 to vector<8x128xf32>
    %203 = arith.addf %201, %202 : vector<8x128xf32>
    %204 = vector.extract_strided_slice %203 {offsets = [0, 0], sizes = [8, 32], strides = [1, 1]} : vector<8x128xf32> to vector<8x32xf32>
    %205 = vector.extract_strided_slice %203 {offsets = [0, 32], sizes = [8, 32], strides = [1, 1]} : vector<8x128xf32> to vector<8x32xf32>
    %206 = vector.extract_strided_slice %203 {offsets = [0, 96], sizes = [8, 32], strides = [1, 1]} : vector<8x128xf32> to vector<8x32xf32>
    %207 = vector.extract_strided_slice %196 {offsets = [0, 64], sizes = [8, 32], strides = [1, 1]} : vector<8x128xf32> to vector<8x32xf32>
    %208 = math.tanh %207 : vector<8x32xf32>
    %209 = arith.mulf %205, %188 : vector<8x32xf32>
    %210 = arith.mulf %204, %208 : vector<8x32xf32>
    %211 = arith.addf %209, %210 : vector<8x32xf32>
    %212 = math.tanh %211 : vector<8x32xf32>
    %213 = arith.mulf %206, %212 : vector<8x32xf32>
    %c8_i32 = arith.constant 8 : i32
    %c0_88 = arith.constant 0 : index
    %c0_89 = arith.constant 0 : index
    %214 = vector.load %arg7[%c0_88, %c0_89] : memref<1x32xf32, #tpu.memory_space<vmem>>, vector<1x32xf32>
    %215 = vector.broadcast %214 : vector<1x32xf32> to vector<8x32xf32>
    %216 = arith.mulf %213, %215 : vector<8x32xf32>
    %cst_90 = arith.constant dense<0.000000e+00> : vector<8xf32>
    %217 = vector.multi_reduction <add>, %216, %cst_90 [1] : vector<8x32xf32> to vector<8xf32>
    %218 = vector.shape_cast %217 : vector<8xf32> to vector<8x1xf32>
    %c0_91 = arith.constant 0 : index
    %c0_92 = arith.constant 0 : index
    %219 = vector.load %arg8[%c0_91, %c0_92] : memref<1x1xf32, #tpu.memory_space<vmem>>, vector<1x1xf32>
    %220 = vector.broadcast %219 : vector<1x1xf32> to vector<8x1xf32>
    %221 = arith.addf %218, %220 : vector<8x1xf32>
    %c0_93 = arith.constant 0 : index
    %c0_94 = arith.constant 0 : index
    %222 = vector.load %arg9[%c0_93, %c0_94] : memref<8x1xf32, #tpu.memory_space<vmem>>, vector<8x1xf32>
    tpu.vector_store %arg9[%c0_93, %c0_94], %221 {strides = array<i32>} : memref<8x1xf32, #tpu.memory_space<vmem>>, vector<8x1xf32>,
    return
  }
  func.func @transform_0(%arg0: i32) -> (i32, i32, i32) {
    %c0_i32 = arith.constant 0 : i32
    %c0_i32_0 = arith.constant 0 : i32
    %c0_i32_1 = arith.constant 0 : i32
    return %c0_i32, %arg0, %c0_i32_0 : i32, i32, i32
  }
  func.func @transform_1(%arg0: i32) -> (i32, i32, i32) {
    %c0_i32 = arith.constant 0 : i32
    %c0_i32_0 = arith.constant 0 : i32
    %c0_i32_1 = arith.constant 0 : i32
    %c0_i32_2 = arith.constant 0 : i32
    return %c0_i32, %c0_i32_0, %c0_i32_1 : i32, i32, i32
  }
  func.func @transform_2(%arg0: i32) -> (i32, i32) {
    %c0_i32 = arith.constant 0 : i32
    %c0_i32_0 = arith.constant 0 : i32
    %c0_i32_1 = arith.constant 0 : i32
    return %c0_i32, %c0_i32_0 : i32, i32
  }
  func.func @transform_3(%arg0: i32) -> (i32, i32) {
    %c0_i32 = arith.constant 0 : i32
    %c0_i32_0 = arith.constant 0 : i32
    %c0_i32_1 = arith.constant 0 : i32
    return %c0_i32, %c0_i32_0 : i32, i32
  }
  func.func @transform_4(%arg0: i32) -> (i32, i32) {
    %c0_i32 = arith.constant 0 : i32
    %c0_i32_0 = arith.constant 0 : i32
    %c0_i32_1 = arith.constant 0 : i32
    return %c0_i32, %c0_i32_0 : i32, i32
  }
  func.func @transform_5(%arg0: i32) -> (i32, i32) {
    %c0_i32 = arith.constant 0 : i32
    %c0_i32_0 = arith.constant 0 : i32
    %c0_i32_1 = arith.constant 0 : i32
    return %c0_i32, %c0_i32_0 : i32, i32
  }
  func.func @transform_6(%arg0: i32) -> (i32, i32) {
    %c0_i32 = arith.constant 0 : i32
    %c0_i32_0 = arith.constant 0 : i32
    %c0_i32_1 = arith.constant 0 : i32
    return %c0_i32, %c0_i32_0 : i32, i32
  }
  func.func @transform_7(%arg0: i32) -> (i32, i32) {
    %c0_i32 = arith.constant 0 : i32
    %c0_i32_0 = arith.constant 0 : i32
    %c0_i32_1 = arith.constant 0 : i32
    return %c0_i32, %c0_i32_0 : i32, i32
  }
  func.func @transform_8(%arg0: i32) -> (i32, i32) {
    %c0_i32 = arith.constant 0 : i32
    %c0_i32_0 = arith.constant 0 : i32
    return %arg0, %c0_i32 : i32, i32
  }
}

</mosaic_0001>

<bundles_post_ra>
// kernel: tpu_custom_call.1
= control target key start
LH: loop header
LB: loop body
LE: loop exit
PB: predicated region body
PF: predicated region fallthrough
CT: control target
= control target key end

     0   :  { %vm69_vm0 = vcmask 1043456   ;;  %vm44_vm1 = vcmask 31744   ;;  %v1806_v16 = vmov 0.0|0.0   ;;  %vm1807_vm2 = vmmov 0   ;;  %s1810_s20 = smov 32   ;;  %s1811_s22 = smov 96   ;;  %s2078_s1 = inlined_call_operand.vmem [shape: f32[3,4,16], index: 1, kind: input, shape index: {}]   ;;  %s2079_s0 = inlined_call_operand.vmem [shape: f32[10,8,4], index: 0, kind: input, shape index: {}]   ;;  %s2080_s3 = inlined_call_operand.vmem [shape: f32[16,128], index: 3, kind: input, shape index: {}]   ;;  %s2081_s5 = inlined_call_operand.vmem [shape: f32[32,128], index: 5, kind: input, shape index: {}]   ;;  %s2082_s2 = inlined_call_operand.vmem [shape: f32[1,16], index: 2, kind: input, shape index: {}]   ;;  %s2083_s4 = inlined_call_operand.vmem [shape: f32[1,128], index: 4, kind: input, shape index: {}]   ;;  %s2084_s6 = inlined_call_operand.vmem [shape: f32[1,32], index: 6, kind: input, shape index: {}]   ;;  %s2085_s7 = inlined_call_operand.<no memory space> [shape: f32[1,1], index: 7, kind: input, shape index: {}]   ;;  %s2086_s8 = inlined_call_operand.vmem [shape: f32[8,1], index: 8, kind: output, shape index: {}]  }
   0x1   :  { %v1413_v0 = vld [vmem:[%s2078_s1 + $0x4] sm:$0xf]  ;;  %v32_v1 = vld [vmem:[%s2079_s0 + $0x8] sm:$0xff]  ;;  %v33_v2 = vld [vmem:[%s2079_s0 + $0x10] sm:$0xff]  ;;  %v1808_v23 = vmov 0.0   ;;  %vm442_vm3 = vcmask 130048  }
   0x2   :  { %1538 = vmatprep.subr.msk.mxu0 %vm69_vm0, %v1413_v0  ;;  %1540 = vmatprep.mubr.msk.f32.mxu0 %vm44_vm1, %v32_v1  ;;  %v41_v3 = vld [vmem:[%s2078_s1] sm:$0xf]  ;;  %v34_v4 = vld [vmem:[%s2079_s0 + $0x18] sm:$0xff]  ;;  %v1432_v5 = vld [vmem:[%s2078_s1 + $0x8] sm:$0xf]  ;;  %vm585_vm4 = vcmask 261120  }
   0x3   :  { %1539 = vmatpush3.msk.msra.mxu0 %vm69_vm0, %v1413_v0  ;;  %v35_v6 = vld [vmem:[%s2079_s0 + $0x20] sm:$0xff]  ;;  %v36_v7 = vld [vmem:[%s2079_s0 + $0x28] sm:$0xff]  ;;  %v37_v8 = vld [vmem:[%s2079_s0 + $0x30] sm:$0xff]  ;;  %vm1407_vm5 = vcmask 7168  }
   0x4   :  { %1541 = vmatmul.mubr.msk.f32.vlgmr.msra.gmra.mrb[0].mxu0 %vm44_vm1, %v33_v2  ;;  %1552 = vmatprep.subr.msk.mxu0 %vm69_vm0, %v41_v3  ;;  %v38_v9 = vld [vmem:[%s2079_s0 + $0x38] sm:$0xff]  ;;  %v39_v10 = vld [vmem:[%s2079_s0 + $0x40] sm:$0xff]  ;;  %v40_v12 = vld [vmem:[%s2079_s0 + $0x48] sm:$0xff] }
   0x5   :  { %1553 = vmatpush3.msk.msra.mxu0 %vm69_vm0, %v41_v3  ;;  %1543 = vmatprep.mubr.msk.f32.mxu0 %vm44_vm1, %v34_v4  ;;  %v31_v11 = vld [vmem:[%s2079_s0] sm:$0xff]  ;;  %v434_v14 = vld [vmem:[%s2080_s3 + $0x8] sm:$0xff]  ;;  %v583_v20 = vld [vmem:[%s2081_s5 + $0x10] sm:$0xff] }
   0x6   :  { %1566 = vmatprep.subr.msk.mxu0 %vm69_vm0, %v1432_v5  ;;  %v433_v13 = vld [vmem:[%s2080_s3] sm:$0xff]  ;;  %v582_v18 = vld [vmem:[%s2081_s5 + $0x8] sm:$0xff]  ;;  %v584_v21 = vld [vmem:[%s2081_s5 + $0x18] sm:$0xff] }
   0x7   :  { %v1684_v15 = vpack.c.bf16 %v434_v14, %v433_v13  ;;  %v581_v17 = vld [vmem:[%s2081_s5] sm:$0xff]  ;;  %v1950_v22 = vpack.c.bf16 %v584_v21, %v583_v20 }
   0x8   :  { %1544 = vmatmul.mubr.msk.f32.gmra.mrb[2].mxu0 %vm44_vm1, %v35_v6  ;;  %v1940_v19 = vpack.c.bf16 %v582_v18, %v581_v17  ;;  %v1442_v24 = vld [vmem:[%s2082_s2] ss:$0 sm:$0xff] }
   0x9   :  { %1546 = vmatprep.mubr.msk.f32.mxu0 %vm44_vm1, %v36_v7  ;;  %1685 = vmatprep.subr.bf16.mxu1 %v1684_v15  ;;  %v1443_v49 = vld [vmem:[%s2083_s4] ss:$0 sm:$0xff]  ;;  %s1809_s4 = smov 64  }
   0xa   :  { %1687 = vmatpush3.bf16.msra.mxu1 %v1684_v15 }
   0xb   :  { %1688 = vmatprep.subr.bf16.mxu1 %v1806_v16 }
   0xc   :  { %1547 = vmatmul.mubr.msk.f32.gmra.mrb[4].mxu0 %vm44_vm1, %v37_v8 }
   0xd   :  { %1549 = vmatprep.mubr.msk.f32.mxu0 %vm44_vm1, %v38_v9 }
  0x10   :  { %1550 = vmatmul.mubr.msk.f32.gmra.mrb[6].mxu0 %vm44_vm1, %v39_v10 }
  0x11   :  { %1554 = vmatprep.mubr.msk.f32.mxu0 %vm44_vm1, %v31_v11 }
  0x14   :  { %1555 = vmatmul.mubr.msk.f32.vlgmr.msra.gmra.mrb[0].mxu0 %vm44_vm1, %v32_v1 }
  0x15   :  { %1567 = vmatpush3.msk.msra.mxu0 %vm69_vm0, %v1432_v5  ;;  %1557 = vmatprep.mubr.msk.f32.mxu0 %vm44_vm1, %v33_v2 }
  0x16   :  { %1712 = vmatprep.subr.bf16.mxu0 %v1806_v16 }
  0x18   :  { %1558 = vmatmul.mubr.msk.f32.gmra.mrb[2].mxu0 %vm44_vm1, %v34_v4 }
  0x19   :  { %1560 = vmatprep.mubr.msk.f32.mxu0 %vm44_vm1, %v35_v6 }
  0x1c   :  { %1561 = vmatmul.mubr.msk.f32.gmra.mrb[4].mxu0 %vm44_vm1, %v36_v7 }
  0x1d   :  { %1563 = vmatprep.mubr.msk.f32.mxu0 %vm44_vm1, %v37_v8 }
  0x20   :  { %1564 = vmatmul.mubr.msk.f32.gmra.mrb[6].mxu0 %vm44_vm1, %v38_v9 }
  0x21   :  { %1568 = vmatprep.mubr.msk.f32.mxu0 %vm44_vm1, %v33_v2 }
  0x24   :  { %1569 = vmatmul.mubr.msk.f32.vlgmr.msra.gmra.mrb[0].mxu0 %vm44_vm1, %v34_v4 }
  0x25   :  { %1571 = vmatprep.mubr.msk.f32.mxu0 %vm44_vm1, %v35_v6  ;;  %1714 = vmatpush3.bf16.msra.mxu0 %v1940_v19 }
  0x26   :  { %1715 = vmatprep.subr.bf16.mxu0 %v1806_v16 }
  0x28   :  { %1572 = vmatmul.mubr.msk.f32.gmra.mrb[2].mxu0 %vm44_vm1, %v36_v7 }
  0x29   :  { %1574 = vmatprep.mubr.msk.f32.mxu0 %vm44_vm1, %v37_v8  ;;  %1717 = vmatpush3.bf16.msra.mxu0 %v1950_v22 }
  0x2a   :  { %1724 = vmatprep.subr.bf16.mxu0 %v1806_v16 }
  0x2c   :  { %1575 = vmatmul.mubr.msk.f32.gmra.mrb[4].mxu0 %vm44_vm1, %v38_v9 }
  0x2d   :  { %1577 = vmatprep.mubr.msk.f32.mxu0 %vm44_vm1, %v39_v10 }
  0x30   :  { %1578 = vmatmul.mubr.msk.f32.gmra.mrb[6].mxu0 %vm44_vm1, %v40_v12 }
  0x31   :  { %1648 = vmatprep.mubr.msk.f32.mxu0 %vm1807_vm2, %v1808_v23 }
  0xf7   :  { %v1570_v25 = vpop.f32.mrb[0].mxu0 }
  0xf8   :  { %v418_v26 = vadd.f32 %v1570_v25, %v1442_v24  ;;  %v363_v27 = vpop.f32.mrb[1].mxu0 }
  0xf9   :  { %v417_v28 = vadd.f32 %v1442_v24, %v363_v27 }
  0xfa   :  { %v426_v31 = vmax.f32 %v418_v26, 0.0 }
  0xfb   :  { %v425_v29 = vmax.f32 %v417_v28, 0.0  ;;  %v1573_v30 = vpop.f32.mrb[2].mxu0 }
  0xfc   :  { %v420_v32 = vadd.f32 %v1573_v30, %v1442_v24  ;;  %v373_v33 = vpop.f32.mrb[3].mxu0 }
  0xfd   :  { %v419_v34 = vadd.f32 %v1442_v24, %v373_v33  ;;  %1584 = vmatprep.mubr.msk.f32.mxu1 %vm442_vm3, %v425_v29 }
  0xfe   :  { %1585 = vmatmul.mubr.msk.f32.vlgmr.msra.gmra.mrb[0].mxu1 %vm442_vm3, %v426_v31  ;;  %v428_v37 = vmax.f32 %v420_v32, 0.0 }
  0xff   :  { %v427_v35 = vmax.f32 %v419_v34, 0.0  ;;  %v1576_v36 = vpop.f32.mrb[4].mxu0  ;;  %1690 = vmatpush3.bf16.msra.mxu1 %v1940_v19 }
 0x100   :  { %v422_v38 = vadd.f32 %v1576_v36, %v1442_v24  ;;  %v383_v39 = vpop.f32.mrb[5].mxu0  ;;  %1691 = vmatprep.subr.bf16.mxu1 %v1806_v16 }
 0x101   :  { %v421_v40 = vadd.f32 %v1442_v24, %v383_v39  ;;  %1587 = vmatprep.mubr.msk.f32.mxu1 %vm442_vm3, %v427_v35 }
 0x102   :  { %1588 = vmatmul.mubr.msk.f32.gmra.mrb[2].mxu1 %vm442_vm3, %v428_v37  ;;  %v430_v43 = vmax.f32 %v422_v38, 0.0 }
 0x103   :  { %v429_v41 = vmax.f32 %v421_v40, 0.0  ;;  %v1579_v42 = vpop.f32.mrb[6].mxu0  ;;  %1693 = vmatpush3.bf16.msra.mxu1 %v1950_v22 }
 0x104   :  { %v424_v44 = vadd.f32 %v1579_v42, %v1442_v24  ;;  %v393_v45 = vpop.f32.mrb[7].mxu0  ;;  %1694 = vmatprep.subr.bf16.mxu1 %v1806_v16 }
 0x105   :  { %v423_v46 = vadd.f32 %v1442_v24, %v393_v45  ;;  %1590 = vmatprep.mubr.msk.f32.mxu1 %vm442_vm3, %v429_v41 }
 0x106   :  { %1591 = vmatmul.mubr.msk.f32.gmra.mrb[4].mxu1 %vm442_vm3, %v430_v43  ;;  %v432_v48 = vmax.f32 %v424_v44, 0.0 }
 0x107   :  { %v431_v47 = vmax.f32 %v423_v46, 0.0 }
 0x109   :  { %1593 = vmatprep.mubr.msk.f32.mxu1 %vm442_vm3, %v431_v47 }
 0x10a   :  { %1594 = vmatmul.mubr.msk.f32.gmra.mrb[6].mxu1 %vm442_vm3, %v432_v48 }
 0x10b   :  { %1604 = vmatprep.mubr.msk.f32.mxu1 %vm1807_vm2, %v1808_v23 }
 0x10e   :  { %1605 = vmatmul.mubr.f32.vlgmr.msra.gmra.mrb[8].mxu1 %v1808_v23 }
 0x10f   :  { %1696 = vmatpush3.bf16.msra.mxu1 %v1940_v19  ;;  %1615 = vmatprep.mubr.msk.f32.mxu1 %vm1807_vm2, %v1808_v23 }
 0x110   :  { %1697 = vmatprep.subr.bf16.mxu1 %v1806_v16 }
 0x113   :  { %1699 = vmatpush3.bf16.msra.mxu1 %v1950_v22 }
 0x114   :  { %1700 = vmatprep.subr.bf16.mxu1 %v1806_v16 }
 0x1d1   :  { %v1586_v50 = vpop.f32.mrb[0].mxu1 }
 0x1d2   :  { %v539_v51 = vadd.f32 %v1586_v50, %v1443_v49  ;;  %v533_v52 = vpop.f32.mrb[1].mxu1 }
 0x1d3   :  { %v534_v1 = vadd.f32 %v1443_v49, %v533_v52 }
 0x1d5   :  { %v1589_v53 = vpop.f32.mrb[2].mxu1 }
 0x1d6   :  { %v1983_v54 = vadd.f32 %v1589_v53, %v1443_v49  ;;  %v543_v55 = vpop.f32.mrb[3].mxu1 }
 0x1d7   :  { %v1985_v56 = vadd.f32 %v1443_v49, %v543_v55 }
 0x1d9   :  { %v1592_v57 = vpop.f32.mrb[4].mxu1 }
 0x1da   :  { %v1987_v58 = vadd.f32 %v1592_v57, %v1443_v49  ;;  %v553_v59 = vpop.f32.mrb[5].mxu1 }
 0x1db   :  { %v1989_v60 = vadd.f32 %v1443_v49, %v553_v59 }
 0x1dd   :  { %v1595_v61 = vpop.f32.mrb[6].mxu1 }
 0x1de   :  { %v1991_v62 = vadd.f32 %v1595_v61, %v1443_v49  ;;  %v563_v63 = vpop.f32.mrb[7].mxu1 }
 0x1df   :  { %v1993_v0 = vadd.f32 %v1443_v49, %v563_v63 }
 0x1e1   :  { %v655_v2 = vpop.f32.mrb[8].mxu1 }
 0x1e2   :  { %v659_v3 = vadd.f32 %v655_v2, %v534_v1  ;;  %v1606_v4 = vpop.f32.mrb[9].mxu1 }
 0x1e4   :  { %1758 = vtanh.f32 %v659_v3  ;;  %v660_v6 = vmul.f32 0.5, %v659_v3 }
 0x1e6   :  { %1760 = vtanh.f32 %v660_v6 }
 0x1ee   :  { %v1759_v5 = vpop.eup %1758 }
 0x1ef   :  { %667 = vrot.lane.b32.xlu0 %v1759_v5, %s1809_s4 }
 0x1f0   :  { %v1761_v7 = vpop.eup %1760 }
 0x1f1   :  { %v662_v8 = vmul.f32 0.5, %v1761_v7 }
 0x1f3   :  { %v663_v9 = vadd.f32 0.5, %v662_v8 }
 0x1f5   :  { %v665_v12 = vmul.f32 0.0, %v663_v9 }
 0x261   :  { %v668_v10 = vpop.permute.xlu0 %667 }
 0x262   :  { %v670_v11 = vmul.f32 %v668_v10, %v663_v9 }
 0x264   :  { %672 = vrot.lane.b32.xlu0 %v670_v11, %s1810_s20 }
 0x2d6   :  { %v673_v13 = vpop.permute.xlu0 %672 }
 0x2d7   :  { %v675_v14 = vadd.f32 %v673_v13, %v665_v12 }
 0x2d9   :  { %1762 = vtanh.f32 %v675_v14 }
 0x2e3   :  { %v1763_v15 = vpop.eup %1762 }
 0x2e4   :  { %678 = vrot.lane.b32.xlu1 %v1763_v15, %s1809_s4 }
 0x356   :  { %v679_v17 = vpop.permute.xlu1 %678 }
 0x357   :  { %v681_v18 = vmul.f32 %v679_v17, %v663_v9 }
 0x359   :  { %685 = vrot.lane.b32.xlu1 %v681_v18, %s1810_s20 }
 0x3cb   :  { %v686_v20 = vpop.permute.xlu1 %685 }
 0x3cc   :  { %1616 = vmatmul.mubr.msk.f32.vlgmr.msra.gmra.mrb[10].mxu1 %vm585_vm4, %v686_v20 }
 0x3cd   :  { %1702 = vmatpush3.bf16.msra.mxu1 %v1940_v19  ;;  %1626 = vmatprep.mubr.msk.f32.mxu1 %vm1807_vm2, %v1808_v23 }
 0x3ce   :  { %1703 = vmatprep.subr.bf16.mxu1 %v1806_v16 }
 0x3d1   :  { %1705 = vmatpush3.bf16.msra.mxu1 %v1950_v22 }
 0x3d2   :  { %1706 = vmatprep.subr.bf16.mxu1 %v1806_v16 }
 0x49f   :  { %v755_v21 = vpop.f32.mrb[10].mxu1 }
 0x4a0   :  { %v759_v24 = vadd.f32 %v755_v21, %v539_v51  ;;  %v1617_v25 = vpop.f32.mrb[11].mxu1 }
 0x4a2   :  { %1764 = vtanh.f32 %v759_v24  ;;  %v760_v27 = vmul.f32 0.5, %v759_v24 }
 0x4a4   :  { %1766 = vtanh.f32 %v760_v27 }
 0x4ac   :  { %v1765_v26 = vpop.eup %1764 }
 0x4ad   :  { %767 = vrot.lane.b32.xlu0 %v1765_v26, %s1809_s4 }
 0x4ae   :  { %v1767_v28 = vpop.eup %1766 }
 0x4af   :  { %v762_v29 = vmul.f32 0.5, %v1767_v28 }
 0x4b1   :  { %v763_v30 = vadd.f32 0.5, %v762_v29 }
 0x4b3   :  { %v765_v33 = vmul.f32 %v763_v30, %v675_v14 }
 0x51f   :  { %v768_v31 = vpop.permute.xlu0 %767 }
 0x520   :  { %v770_v32 = vmul.f32 %v768_v31, %v763_v30 }
 0x522   :  { %772 = vrot.lane.b32.xlu1 %v770_v32, %s1810_s20 }
 0x594   :  { %v773_v34 = vpop.permute.xlu1 %772 }
 0x595   :  { %v775_v35 = vadd.f32 %v773_v34, %v765_v33 }
 0x597   :  { %1768 = vtanh.f32 %v775_v35 }
 0x5a1   :  { %v1769_v36 = vpop.eup %1768 }
 0x5a2   :  { %778 = vrot.lane.b32.xlu0 %v1769_v36, %s1809_s4 }
 0x614   :  { %v779_v37 = vpop.permute.xlu0 %778 }
 0x615   :  { %v781_v38 = vmul.f32 %v779_v37, %v763_v30 }
 0x617   :  { %785 = vrot.lane.b32.xlu1 %v781_v38, %s1810_s20 }
 0x689   :  { %v786_v39 = vpop.permute.xlu1 %785 }
 0x68a   :  { %1627 = vmatmul.mubr.msk.f32.vlgmr.msra.gmra.mrb[12].mxu1 %vm585_vm4, %v786_v39 }
 0x68b   :  { %1708 = vmatpush3.bf16.msra.mxu1 %v1940_v19  ;;  %1637 = vmatprep.mubr.msk.f32.mxu1 %vm1807_vm2, %v1808_v23 }
 0x68c   :  { %1709 = vmatprep.subr.bf16.mxu1 %v1806_v16 }
 0x68f   :  { %1711 = vmatpush3.bf16.msra.mxu1 %v1950_v22 }
 0x690   :  { %1718 = vmatprep.subr.bf16.mxu1 %v1806_v16 }
 0x75d   :  { %v855_v40 = vpop.f32.mrb[12].mxu1 }
 0x75e   :  { %v859_v41 = vadd.f32 %v855_v40, %v1985_v56  ;;  %v1628_v42 = vpop.f32.mrb[13].mxu1 }
 0x760   :  { %1770 = vtanh.f32 %v859_v41  ;;  %v860_v44 = vmul.f32 0.5, %v859_v41 }
 0x762   :  { %1772 = vtanh.f32 %v860_v44 }
 0x76a   :  { %v1771_v43 = vpop.eup %1770 }
 0x76b   :  { %867 = vrot.lane.b32.xlu0 %v1771_v43, %s1809_s4 }
 0x76c   :  { %v1773_v45 = vpop.eup %1772 }
 0x76d   :  { %v862_v46 = vmul.f32 0.5, %v1773_v45 }
 0x76f   :  { %v863_v47 = vadd.f32 0.5, %v862_v46 }
 0x771   :  { %v865_v50 = vmul.f32 %v863_v47, %v775_v35 }
 0x7dd   :  { %v868_v48 = vpop.permute.xlu0 %867 }
 0x7de   :  { %v870_v49 = vmul.f32 %v868_v48, %v863_v47 }
 0x7e0   :  { %872 = vrot.lane.b32.xlu1 %v870_v49, %s1810_s20 }
 0x852   :  { %v873_v51 = vpop.permute.xlu1 %872 }
 0x853   :  { %v875_v52 = vadd.f32 %v873_v51, %v865_v50 }
 0x855   :  { %1774 = vtanh.f32 %v875_v52 }
 0x85f   :  { %v1775_v53 = vpop.eup %1774 }
 0x860   :  { %878 = vrot.lane.b32.xlu0 %v1775_v53, %s1809_s4 }
 0x8d2   :  { %v879_v55 = vpop.permute.xlu0 %878 }
 0x8d3   :  { %v881_v56 = vmul.f32 %v879_v55, %v863_v47 }
 0x8d5   :  { %885 = vrot.lane.b32.xlu1 %v881_v56, %s1810_s20 }
 0x947   :  { %v886_v57 = vpop.permute.xlu1 %885 }
 0x948   :  { %1638 = vmatmul.mubr.msk.f32.vlgmr.msra.gmra.mrb[14].mxu1 %vm585_vm4, %v886_v57 }
 0x949   :  { %1720 = vmatpush3.bf16.msra.mxu1 %v1940_v19  ;;  %1659 = vmatprep.mubr.msk.f32.mxu1 %vm1807_vm2, %v1808_v23 }
 0x94a   :  { %1721 = vmatprep.subr.bf16.mxu1 %v1806_v16 }
 0x94d   :  { %1723 = vmatpush3.bf16.msra.mxu1 %v1950_v22 }
 0x94e   :  { %1730 = vmatprep.subr.bf16.mxu1 %v1806_v16 }
 0xa1b   :  { %v955_v59 = vpop.f32.mrb[14].mxu1 }
 0xa1c   :  { %v959_v61 = vadd.f32 %v955_v59, %v1983_v54  ;;  %v1639_v63 = vpop.f32.mrb[15].mxu1 }
 0xa1e   :  { %1776 = vtanh.f32 %v959_v61  ;;  %v960_v2 = vmul.f32 0.5, %v959_v61 }
 0xa20   :  { %1778 = vtanh.f32 %v960_v2 }
 0xa28   :  { %v1777_v1 = vpop.eup %1776 }
 0xa29   :  { %967 = vrot.lane.b32.xlu0 %v1777_v1, %s1809_s4 }
 0xa2a   :  { %v1779_v3 = vpop.eup %1778 }
 0xa2b   :  { %v962_v4 = vmul.f32 0.5, %v1779_v3 }
 0xa2d   :  { %v963_v5 = vadd.f32 0.5, %v962_v4 }
 0xa2f   :  { %v965_v8 = vmul.f32 %v963_v5, %v875_v52 }
 0xa9b   :  { %v968_v6 = vpop.permute.xlu0 %967 }
 0xa9c   :  { %v970_v7 = vmul.f32 %v968_v6, %v963_v5 }
 0xa9e   :  { %972 = vrot.lane.b32.xlu1 %v970_v7, %s1810_s20 }
 0xb10   :  { %v973_v9 = vpop.permute.xlu1 %972 }
 0xb11   :  { %v975_v10 = vadd.f32 %v973_v9, %v965_v8 }
 0xb13   :  { %1780 = vtanh.f32 %v975_v10 }
 0xb1d   :  { %v1781_v11 = vpop.eup %1780 }
 0xb1e   :  { %978 = vrot.lane.b32.xlu0 %v1781_v11, %s1809_s4 }
 0xb90   :  { %v979_v54 = vpop.permute.xlu0 %978 }
 0xb91   :  { %v981_v12 = vmul.f32 %v979_v54, %v963_v5 }
 0xb93   :  { %985 = vrot.lane.b32.xlu1 %v981_v12, %s1810_s20  ;;  %v1459_v12 = vld [vmem:[%s2084_s6] ss:$0 sm:$0xff] }
 0xc05   :  { %v986_v13 = vpop.permute.xlu1 %985 }
 0xc06   :  { %1649 = vmatmul.mubr.msk.f32.vlgmr.msra.gmra.mrb[8].mxu0 %vm585_vm4, %v986_v13 }
 0xc07   :  { %1726 = vmatpush3.bf16.msra.mxu0 %v1940_v19  ;;  %1670 = vmatprep.mubr.msk.f32.mxu0 %vm1807_vm2, %v1808_v23 }
 0xc08   :  { %1727 = vmatprep.subr.bf16.mxu0 %v1806_v16 }
 0xc0b   :  { %1729 = vmatpush3.bf16.msra.mxu0 %v1950_v22 }
 0xcd9   :  { %v1055_v14 = vpop.f32.mrb[8].mxu0 }
 0xcda   :  { %v1059_v15 = vadd.f32 %v1055_v14, %v1989_v60  ;;  %v1650_v17 = vpop.f32.mrb[9].mxu0 }
 0xcdb   :  { %v13_v17 = vstv %s2085_s7 }
 0xcdc   :  { %1782 = vtanh.f32 %v1059_v15  ;;  %v1060_v20 = vmul.f32 0.5, %v1059_v15  ;;  %14 = vst [vmem:[#allocation3] sm:$0x1] %v13_v17 }
 0xcde   :  { %1784 = vtanh.f32 %v1060_v20 }
 0xce6   :  { %v1783_v18 = vpop.eup %1782 }
 0xce7   :  { %1067 = vrot.lane.b32.xlu0 %v1783_v18, %s1809_s4 }
 0xce8   :  { %v1785_v21 = vpop.eup %1784 }
 0xce9   :  { %v1062_v24 = vmul.f32 0.5, %v1785_v21 }
 0xceb   :  { %v1063_v25 = vadd.f32 0.5, %v1062_v24 }
 0xced   :  { %v1065_v28 = vmul.f32 %v1063_v25, %v975_v10 }
 0xd59   :  { %v1068_v26 = vpop.permute.xlu0 %1067 }
 0xd5a   :  { %v1070_v27 = vmul.f32 %v1068_v26, %v1063_v25 }
 0xd5c   :  { %1072 = vrot.lane.b32.xlu1 %v1070_v27, %s1810_s20  ;;  %v1460_v27 = vld [vmem:[#allocation3] ss:$0 sm:$0xff] }
 0xdce   :  { %v1073_v29 = vpop.permute.xlu1 %1072 }
 0xdcf   :  { %v1075_v30 = vadd.f32 %v1073_v29, %v1065_v28 }
 0xdd1   :  { %1786 = vtanh.f32 %v1075_v30 }
 0xddb   :  { %v1787_v31 = vpop.eup %1786 }
 0xddc   :  { %1078 = vrot.lane.b32.xlu0 %v1787_v31, %s1809_s4 }
 0xe4e   :  { %v1079_v60 = vpop.permute.xlu0 %1078 }
 0xe4f   :  { %v1081_v32 = vmul.f32 %v1079_v60, %v1063_v25 }
 0xe51   :  { %1085 = vrot.lane.b32.xlu1 %v1081_v32, %s1810_s20 }
 0xec3   :  { %v1086_v33 = vpop.permute.xlu1 %1085 }
 0xec4   :  { %1660 = vmatmul.mubr.msk.f32.vlgmr.msra.gmra.mrb[16].mxu1 %vm585_vm4, %v1086_v33 }
 0xec5   :  { %1732 = vmatpush3.bf16.msra.mxu1 %v1940_v19  ;;  %1681 = vmatprep.mubr.msk.f32.mxu1 %vm1807_vm2, %v1808_v23 }
 0xec6   :  { %1733 = vmatprep.subr.bf16.mxu1 %v1806_v16 }
 0xec9   :  { %1735 = vmatpush3.bf16.msra.mxu1 %v1950_v22 }
 0xf97   :  { %v1155_v34 = vpop.f32.mrb[16].mxu1 }
 0xf98   :  { %v1159_v35 = vadd.f32 %v1155_v34, %v1987_v58  ;;  %v1661_v36 = vpop.f32.mrb[17].mxu1 }
 0xf9a   :  { %1788 = vtanh.f32 %v1159_v35  ;;  %v1160_v38 = vmul.f32 0.5, %v1159_v35 }
 0xf9c   :  { %1790 = vtanh.f32 %v1160_v38 }
 0xfa4   :  { %v1789_v37 = vpop.eup %1788 }
 0xfa5   :  { %1167 = vrot.lane.b32.xlu0 %v1789_v37, %s1809_s4 }
 0xfa6   :  { %v1791_v39 = vpop.eup %1790 }
 0xfa7   :  { %v1162_v40 = vmul.f32 0.5, %v1791_v39 }
 0xfa9   :  { %v1163_v19 = vadd.f32 0.5, %v1162_v40 }
 0xfab   :  { %v1165_v16 = vmul.f32 %v1163_v19, %v1075_v30 }
0x1017   :  { %v1168_v41 = vpop.permute.xlu0 %1167 }
0x1018   :  { %v1170_v42 = vmul.f32 %v1168_v41, %v1163_v19 }
0x101a   :  { %1172 = vrot.lane.b32.xlu1 %v1170_v42, %s1810_s20 }
0x108c   :  { %v1173_v23 = vpop.permute.xlu1 %1172 }
0x108d   :  { %v1175_v22 = vadd.f32 %v1173_v23, %v1165_v16 }
0x108f   :  { %1792 = vtanh.f32 %v1175_v22 }
0x1099   :  { %v1793_v43 = vpop.eup %1792 }
0x109a   :  { %1178 = vrot.lane.b32.xlu0 %v1793_v43, %s1809_s4 }
0x110c   :  { %v1179_v58 = vpop.permute.xlu0 %1178 }
0x110d   :  { %v1181_v44 = vmul.f32 %v1179_v58, %v1163_v19 }
0x110f   :  { %1185 = vrot.lane.b32.xlu1 %v1181_v44, %s1810_s20 }
0x1181   :  { %v1186_v45 = vpop.permute.xlu1 %1185 }
0x1182   :  { %1671 = vmatmul.mubr.msk.f32.vlgmr.msra.gmra.mrb[10].mxu0 %vm585_vm4, %v1186_v45 }
0x1255   :  { %v1255_v46 = vpop.f32.mrb[10].mxu0 }
0x1256   :  { %v1259_v47 = vadd.f32 %v1255_v46, %v1993_v0  ;;  %v1672_v48 = vpop.f32.mrb[11].mxu0 }
0x1258   :  { %1794 = vtanh.f32 %v1259_v47  ;;  %v1260_v50 = vmul.f32 0.5, %v1259_v47 }
0x125a   :  { %1796 = vtanh.f32 %v1260_v50 }
0x1262   :  { %v1795_v49 = vpop.eup %1794 }
0x1263   :  { %1267 = vrot.lane.b32.xlu0 %v1795_v49, %s1809_s4 }
0x1264   :  { %v1797_v51 = vpop.eup %1796 }
0x1265   :  { %v1262_v52 = vmul.f32 0.5, %v1797_v51 }
0x1267   :  { %v1263_v53 = vadd.f32 0.5, %v1262_v52 }
0x1269   :  { %v1265_v57 = vmul.f32 %v1263_v53, %v1175_v22 }
0x12d5   :  { %v1268_v55 = vpop.permute.xlu0 %1267 }
0x12d6   :  { %v1270_v56 = vmul.f32 %v1268_v55, %v1263_v53 }
0x12d8   :  { %1272 = vrot.lane.b32.xlu1 %v1270_v56, %s1810_s20 }
0x134a   :  { %v1273_v59 = vpop.permute.xlu1 %1272 }
0x134b   :  { %v1275_v61 = vadd.f32 %v1273_v59, %v1265_v57 }
0x134d   :  { %1798 = vtanh.f32 %v1275_v61 }
0x1357   :  { %v1799_v63 = vpop.eup %1798 }
0x1358   :  { %1278 = vrot.lane.b32.xlu0 %v1799_v63, %s1809_s4 }
0x13ca   :  { %v1279_v0 = vpop.permute.xlu0 %1278 }
0x13cb   :  { %v1281_v1 = vmul.f32 %v1279_v0, %v1263_v53 }
0x13cd   :  { %1285 = vrot.lane.b32.xlu1 %v1281_v1, %s1810_s20 }
0x143f   :  { %v1286_v2 = vpop.permute.xlu1 %1285 }
0x1440   :  { %1682 = vmatmul.mubr.msk.f32.vlgmr.msra.gmra.mrb[18].mxu1 %vm585_vm4, %v1286_v2 }
0x1513   :  { %v1355_v3 = vpop.f32.mrb[18].mxu1 }
0x1514   :  { %v1359_v4 = vadd.f32 %v1355_v3, %v1991_v62  ;;  %v1683_v5 = vpop.f32.mrb[19].mxu1 }
0x1516   :  { %1800 = vtanh.f32 %v1359_v4  ;;  %v1360_v7 = vmul.f32 0.5, %v1359_v4 }
0x1518   :  { %1802 = vtanh.f32 %v1360_v7 }
0x1520   :  { %v1801_v6 = vpop.eup %1800 }
0x1521   :  { %1367 = vrot.lane.b32.xlu0 %v1801_v6, %s1809_s4 }
0x1522   :  { %v1803_v8 = vpop.eup %1802 }
0x1523   :  { %v1362_v9 = vmul.f32 0.5, %v1803_v8 }
0x1525   :  { %v1363_v10 = vadd.f32 0.5, %v1362_v9 }
0x1527   :  { %v1365_v62 = vmul.f32 %v1363_v10, %v1275_v61 }
0x1593   :  { %v1368_v11 = vpop.permute.xlu0 %1367 }
0x1594   :  { %v1370_v54 = vmul.f32 %v1368_v11, %v1363_v10 }
0x1596   :  { %1372 = vrot.lane.b32.xlu1 %v1370_v54, %s1810_s20 }
0x159a   :  { %1388 = vrot.lane.b32.xlu1 %v1459_v12, %s1811_s22 }
0x1608   :  { %v1373_v13 = vpop.permute.xlu1 %1372 }
0x1609   :  { %v1375_v14 = vadd.f32 %v1373_v13, %v1365_v62 }
0x160b   :  { %1804 = vtanh.f32 %v1375_v14 }
0x160c   :  { %v1389_v20 = vpop.permute.xlu1 %1388 }
0x1615   :  { %v1805_v15 = vpop.eup %1804 }
0x1616   :  { %1378 = vrot.lane.b32.xlu0 %v1805_v15, %s1809_s4 }
0x1688   :  { %v1379_v18 = vpop.permute.xlu0 %1378 }
0x1689   :  { %v1381_v21 = vmul.f32 %v1379_v18, %v1363_v10 }
0x168b   :  { %v1391_v24 = vmul.f32 %v1389_v20, %v1381_v21 }
0x168d   :  { %1393 = vrot.lane.b32.xlu0 %v1391_v24, %s1810_s20 }
0x16ff   :  { %v1394_v25 = vpop.permute.xlu0 %1393 }
0x1700   :  { %v1396_v26 = vsel %vm585_vm4, %v1394_v25, 0.0 }
0x1701   :  { %1397 = vadd.xlane.f32.xlu1 %v1396_v26 }
0x178e   :  { %v1398_v28 = vpop.xlane.xlu1 %1397 }
0x178f   :  { %v1406_v29 = vadd.f32 %v1460_v27, %v1398_v28 }
0x1791   :  { %1408 = vst.msk [vmem:[%s2086_s8] sm:$0xff] %vm1407_vm5, %v1406_v29 }

</bundles_post_ra>
